<compile_context>
chip_gen: v7x
topology: tpu7x:2x2x1
jax: 0.10.0
libtpu: 0.0.40
codegen_flags: <defaults>
</compile_context>

<pallas_src>
import functools
import math

import jax
import jax.numpy as jnp
from jax.experimental import pallas as pl
from jax.experimental.pallas import tpu as pltpu

_VMEM_LIMIT_BYTES = 48 * 1024 * 1024   # fits v7x's 64 MiB physical VMEM with headroom


# ---------------------------------------------------------------------------
# Kernel 1: fused per-head Q/K/V projection.
#   x block (1, TR, D)  ->  q/k/v blocks (1, H, TR, dh)
# Weights come in head-major layout (H, D, dh); the attention scale is already
# folded into wq/bq by the wrapper, so downstream attention needs no scaling.
# ---------------------------------------------------------------------------
def qkv_proj_kernel(x_ref, wq_ref, bq_ref, wk_ref, bk_ref, wv_ref, bv_ref,
                    q_ref, k_ref, v_ref, *, n_heads):
    x = x_ref[0]                                   # (TR, D), compute dtype
    for h in range(n_heads):                       # static unroll; n_heads is small
        q_ref[0, h] = (jnp.dot(x, wq_ref[h], preferred_element_type=jnp.float32)
                       + bq_ref[h]).astype(q_ref.dtype)
        k_ref[0, h] = (jnp.dot(x, wk_ref[h], preferred_element_type=jnp.float32)
                       + bk_ref[h]).astype(k_ref.dtype)
        v_ref[0, h] = (jnp.dot(x, wv_ref[h], preferred_element_type=jnp.float32)
                       + bv_ref[h]).astype(v_ref.dtype)


# ---------------------------------------------------------------------------
# Kernel 2: flash-style attention over kv blocks + full epilogue at the last
# kv step (output projection with folded head concat, LN, residual, K-tiled
# FFN, LN, residual).  Grid = (B, T//TQ, T//TKV), kv axis innermost/"arbitrary".
# ---------------------------------------------------------------------------
def attn_ffn_kernel(q_ref, k_ref, v_ref, x_ref,
                    wo_ref, bo_ref, g1_ref, be1_ref,
                    w1_ref, b1_ref, w2_ref, b2_ref, g2_ref, be2_ref,
                    out_ref,
                    m_scr, l_scr, acc_scr,
                    *, n_heads, eps, ff_chunk, approx_recip):
    kv = pl.program_id(2)

    @pl.when(kv == 0)
    def _init():
        m_scr[...] = jnp.full(m_scr.shape, -jnp.inf, dtype=m_scr.dtype)
        l_scr[...] = jnp.zeros(l_scr.shape, dtype=l_scr.dtype)
        acc_scr[...] = jnp.zeros(acc_scr.shape, dtype=acc_scr.dtype)

    q = q_ref[0]                                   # (H, TQ,  dh), pre-scaled by 1/sqrt(D)
    k = k_ref[0]                                   # (H, TKV, dh)
    v = v_ref[0]                                   # (H, TKV, dh)

    # --- online softmax update (scores / stats in f32) ---
    s = jnp.einsum("hqd,hkd->hqk", q, k, preferred_element_type=jnp.float32)
    m_prev = m_scr[...]
    m_new = jnp.maximum(m_prev, jnp.max(s, axis=-1, keepdims=True))
    alpha = jnp.exp(m_prev - m_new)
    p = jnp.exp(s - m_new)
    l_scr[...] = alpha * l_scr[...] + jnp.sum(p, axis=-1, keepdims=True)
    acc_scr[...] = alpha * acc_scr[...] + jnp.einsum(
        "hqk,hkd->hqd", p.astype(v.dtype), v, preferred_element_type=jnp.float32)
    m_scr[...] = m_new

    @pl.when(kv == pl.num_programs(2) - 1)
    def _finalize():
        # normalize; fold head concat into the output projection: y = sum_h attn_h @ wo[h]
        attn = acc_scr[...] * pl.reciprocal(l_scr[...], approx=approx_recip)
        attn = attn.astype(wo_ref.dtype)           # (H, TQ, dh) in compute dtype
        x_blk = x_ref[0].astype(jnp.float32)       # (TQ, D)

        y = jnp.zeros_like(x_blk)
        for h in range(n_heads):                   # static unroll
            y = y + jnp.dot(attn[h], wo_ref[h], preferred_element_type=jnp.float32)
        y = y + bo_ref[...]

        # module's custom LayerNorm: gamma * (x - mean) / (unbiased_std + eps) + beta
        def layer_norm(t, gamma, beta):
            mean = jnp.mean(t, axis=-1, keepdims=True)
            diff = t - mean
            var = jnp.sum(diff * diff, axis=-1, keepdims=True) / (t.shape[-1] - 1)
            inv = pl.reciprocal(jnp.sqrt(var) + eps, approx=approx_recip)
            return gamma * diff * inv + beta

        x1 = x_blk + layer_norm(y, g1_ref[...], be1_ref[...])     # residual 1

        # FeedForward, K-tiled over the hidden dimension with f32 accumulation.
        x1_c = x1.astype(w1_ref.dtype)
        ff = jnp.zeros_like(x_blk)
        d_hidden = w1_ref.shape[-1]
        for c0 in range(0, d_hidden, ff_chunk):    # static unroll
            c1 = c0 + ff_chunk
            h1 = (jnp.dot(x1_c, w1_ref[:, c0:c1], preferred_element_type=jnp.float32)
                  + b1_ref[:, c0:c1])
            h1 = jnp.maximum(h1, 0.0).astype(w2_ref.dtype)
            ff = ff + jnp.dot(h1, w2_ref[c0:c1, :], preferred_element_type=jnp.float32)
        ff = ff + b2_ref[...]

        out_ref[0] = (x1 + layer_norm(ff, g2_ref[...], be2_ref[...])).astype(out_ref.dtype)


# ---------------------------------------------------------------------------
# Wrapper
# ---------------------------------------------------------------------------
def encoder_layer(x, params, *, n_heads, d_model, eps=1e-6,
                  compute_dtype=jnp.float32):
    B, T, D = x.shape
    assert D == d_model and D % n_heads == 0
    dh = D // n_heads
    d_hidden = params["w1"].shape[1]
    inv_scale = 1.0 / math.sqrt(d_model)
    cdt = compute_dtype
    f32 = jnp.float32

    # --- sequence / hidden tiling (bounded VMEM; re-derived for v7x's 64 MiB) ---
    TQ = 128 if T % 128 == 0 else T            # query rows per grid step
    TKV = 256 if T % 256 == 0 else T           # kv rows streamed per inner grid step
    ff_chunk = 512 if (d_hidden > 512 and d_hidden % 512 == 0) else d_hidden

    # --- head-major parameter layouts (fold head split/concat into the weights) ---
    # softmax(q k^T / s) == softmax((q/s) k^T): fold 1/sqrt(d_model) into wq / bq.
    wq = (params["wq"] * inv_scale).reshape(D, n_heads, dh).transpose(1, 0, 2).astype(cdt)
    wk = params["wk"].reshape(D, n_heads, dh).transpose(1, 0, 2).astype(cdt)
    wv = params["wv"].reshape(D, n_heads, dh).transpose(1, 0, 2).astype(cdt)
    bq = (params["bq"] * inv_scale).reshape(n_heads, 1, dh).astype(f32)
    bk = params["bk"].reshape(n_heads, 1, dh).astype(f32)
    bv = params["bv"].reshape(n_heads, 1, dh).astype(f32)
    wo = params["wo"].reshape(n_heads, dh, D).astype(cdt)          # (H, dh, D)
    bo = params["bo"].reshape(1, D).astype(f32)
    g1 = params["g1"].reshape(1, D).astype(f32)
    be1 = params["be1"].reshape(1, D).astype(f32)
    w1 = params["w1"].astype(cdt)                                  # (D, d_hidden)
    b1 = params["b1"].reshape(1, d_hidden).astype(f32)
    w2 = params["w2"].astype(cdt)                                  # (d_hidden, D)
    b2 = params["b2"].reshape(1, D).astype(f32)
    g2 = params["g2"].reshape(1, D).astype(f32)
    be2 = params["be2"].reshape(1, D).astype(f32)

    x_c = x.astype(cdt)

    def _const2(p):
        z = (0,) * p.ndim
        return pl.BlockSpec(p.shape, lambda b, r, _z=z: _z)

    def _const3(p):
        z = (0,) * p.ndim
        return pl.BlockSpec(p.shape, lambda b, qi, ki, _z=z: _z)

    # ----------------------- kernel 1: Q/K/V projection -----------------------
    qkv_cost = pl.CostEstimate(
        flops=int(6 * B * T * D * D),
        transcendentals=0,
        bytes_accessed=int(4 * (4 * B * T * D + 3 * D * D)),
    )
    q, k, v = pl.pallas_call(
        functools.partial(qkv_proj_kernel, n_heads=n_heads),
        out_shape=[jax.ShapeDtypeStruct((B, n_heads, T, dh), cdt)] * 3,
        grid_spec=pltpu.PrefetchScalarGridSpec(
            num_scalar_prefetch=0,
            grid=(B, T // TQ),
            in_specs=[pl.BlockSpec((1, TQ, D), lambda b, r: (b, r, 0))]
                     + [_const2(p) for p in (wq, bq, wk, bk, wv, bv)],
            out_specs=[pl.BlockSpec((1, n_heads, TQ, dh), lambda b, r: (b, 0, r, 0))] * 3,
        ),
        compiler_params=pltpu.CompilerParams(
            dimension_semantics=("parallel", "parallel"),
            vmem_limit_bytes=_VMEM_LIMIT_BYTES),
        cost_estimate=qkv_cost,
    )(x_c, wq, bq, wk, bk, wv, bv)

    # ------------------ kernel 2: attention + LN/residual/FFN ------------------
    attn_cost = pl.CostEstimate(
        flops=int(B * (4 * T * T * D + 2 * T * D * D + 4 * T * D * d_hidden)),
        transcendentals=int(B * n_heads * T * T),
        bytes_accessed=int(4 * (5 * B * T * D + D * D + 2 * D * d_hidden)),
    )
    approx_recip = bool(jnp.dtype(cdt) == jnp.dtype(jnp.bfloat16))
    out = pl.pallas_call(
        functools.partial(attn_ffn_kernel, n_heads=n_heads, eps=eps,
                          ff_chunk=ff_chunk, approx_recip=approx_recip),
        out_shape=jax.ShapeDtypeStruct((B, T, D), f32),
        grid_spec=pltpu.PrefetchScalarGridSpec(
            num_scalar_prefetch=0,
            grid=(B, T // TQ, T // TKV),
            in_specs=[
                pl.BlockSpec((1, n_heads, TQ, dh), lambda b, qi, ki: (b, 0, qi, 0)),
                pl.BlockSpec((1, n_heads, TKV, dh), lambda b, qi, ki: (b, 0, ki, 0)),
                pl.BlockSpec((1, n_heads, TKV, dh), lambda b, qi, ki: (b, 0, ki, 0)),
                pl.BlockSpec((1, TQ, D), lambda b, qi, ki: (b, qi, 0)),
            ] + [_const3(p) for p in (wo, bo, g1, be1, w1, b1, w2, b2, g2, be2)],
            out_specs=pl.BlockSpec((1, TQ, D), lambda b, qi, ki: (b, qi, 0)),
            scratch_shapes=[
                pltpu.VMEM((n_heads, TQ, 1), f32),      # running max (m)
                pltpu.VMEM((n_heads, TQ, 1), f32),      # running denominator (l)
                pltpu.VMEM((n_heads, TQ, dh), f32),     # running numerator (acc)
            ],
        ),
        compiler_params=pltpu.CompilerParams(
            dimension_semantics=("parallel", "parallel", "arbitrary"),
            vmem_limit_bytes=_VMEM_LIMIT_BYTES),
        cost_estimate=attn_cost,
    )(q, k, v, x_c, wo, bo, g1, be1, w1, b1, w2, b2, g2, be2)
    return out


# ---------------------------------------------------------------------------
# Pure-JAX reference mirroring the PyTorch semantics (eval mode)
# ---------------------------------------------------------------------------
def reference(x, p, *, n_heads, d_model, eps=1e-6):
    scale = math.sqrt(d_model)

    def ln(t, g, b):
        mean = t.mean(-1, keepdims=True)
        diff = t - mean
        std = jnp.sqrt((diff * diff).sum(-1, keepdims=True) / (t.shape[-1] - 1))
        return g * diff / (std + eps) + b

    q = x @ p["wq"] + p["bq"]
    k = x @ p["wk"] + p["bk"]
    v = x @ p["wv"] + p["bv"]
    B, T, D = x.shape
    dh = D // n_heads
    outs = []
    for h in range(n_heads):
        qh, kh, vh = (t[..., h * dh:(h + 1) * dh] for t in (q, k, v))
        s = jnp.einsum("btd,bsd->bts", qh, kh) / scale
        pr = jax.nn.softmax(s, axis=-1)
        outs.append(jnp.einsum("bts,bsd->btd", pr, vh))
    attn = jnp.concatenate(outs, axis=-1)
    y = attn @ p["wo"] + p["bo"]
    x1 = x + ln(y, p["g1"], p["be1"])
    ff = jnp.maximum(x1 @ p["w1"] + p["b1"], 0.0) @ p["w2"] + p["b2"]
    return x1 + ln(ff, p["g2"], p["be2"])


if __name__ == "__main__":
    B, T = 2, 8
    d_model, d_hidden, n_heads = 32, 64, 4

    key = jax.random.PRNGKey(0)
    ks = jax.random.split(key, 17)

    def lin_w(kw, fan_in, fan_out):
        bound = 1.0 / math.sqrt(fan_in)
        return jax.random.uniform(kw, (fan_in, fan_out), jnp.float32, -bound, bound)

    def lin_b(kb, fan_in, fan_out):
        bound = 1.0 / math.sqrt(fan_in)
        return jax.random.uniform(kb, (1, fan_out), jnp.float32, -bound, bound)

    params = {
        "wq": lin_w(ks[0], d_model, d_model), "bq": lin_b(ks[1], d_model, d_model),
        "wk": lin_w(ks[2], d_model, d_model), "bk": lin_b(ks[3], d_model, d_model),
        "wv": lin_w(ks[4], d_model, d_model), "bv": lin_b(ks[5], d_model, d_model),
        "wo": lin_w(ks[6], d_model, d_model), "bo": lin_b(ks[7], d_model, d_model),
        "g1": 1.0 + 0.1 * jax.random.normal(ks[8], (1, d_model), jnp.float32),
        "be1": 0.1 * jax.random.normal(ks[9], (1, d_model), jnp.float32),
        "w1": lin_w(ks[10], d_model, d_hidden), "b1": lin_b(ks[11], d_model, d_hidden),
        "w2": lin_w(ks[12], d_hidden, d_model), "b2": lin_b(ks[13], d_hidden, d_model),
        "g2": 1.0 + 0.1 * jax.random.normal(ks[14], (1, d_model), jnp.float32),
        "be2": 0.1 * jax.random.normal(ks[15], (1, d_model), jnp.float32),
    }

    x = jax.random.normal(ks[16], (B, T, d_model), jnp.float32)

    ref = reference(x, params, n_heads=n_heads, d_model=d_model)

    # f32 path: strict check against the pure-JAX reference.
    out = jax.block_until_ready(
        encoder_layer(x, params, n_heads=n_heads, d_model=d_model))
    assert out.shape == (B, T, d_model)
    assert jnp.allclose(out, ref, atol=1e-4, rtol=1e-4), "f32 mismatch vs reference"

    # bf16 MXU path (f32 accumulation): loose sanity check.
    out_bf16 = jax.block_until_ready(
        encoder_layer(x, params, n_heads=n_heads, d_model=d_model,
                      compute_dtype=jnp.bfloat16))
    assert bool(jnp.all(jnp.isfinite(out_bf16)))
    assert float(jnp.max(jnp.abs(out_bf16 - ref))) < 0.5, "bf16 path diverged"

    print("KERNEL_OK")
</pallas_src>

<mosaic_0001>
module attributes {stable_mosaic.version = 11 : i64} {
  func.func @qkv_proj_kernel(%arg0: i32, %arg1: i32, %arg2: memref<1x8x32xf32, #tpu.memory_space<vmem>>, %arg3: memref<4x32x8xf32, #tpu.memory_space<vmem>>, %arg4: memref<4x1x8xf32, #tpu.memory_space<vmem>>, %arg5: memref<4x32x8xf32, #tpu.memory_space<vmem>>, %arg6: memref<4x1x8xf32, #tpu.memory_space<vmem>>, %arg7: memref<4x32x8xf32, #tpu.memory_space<vmem>>, %arg8: memref<4x1x8xf32, #tpu.memory_space<vmem>>, %arg9: memref<1x4x8x8xf32, #tpu.memory_space<vmem>>, %arg10: memref<1x4x8x8xf32, #tpu.memory_space<vmem>>, %arg11: memref<1x4x8x8xf32, #tpu.memory_space<vmem>>) attributes {dimension_semantics = [#tpu.dimension_semantics<parallel>, #tpu.dimension_semantics<parallel>], iteration_bounds = array<i64: 2, 1>, scalar_prefetch = 0 : i64, scratch_operands = 0 : i64, tpu.core_type = #tpu.core_type<tc>, window_params = [{transform_indices = @transform_0, window_bounds = array<i64: 1, 8, 32>}, {pipeline_mode = #tpu.pipeline_mode<synchronous>, transform_indices = @transform_1, window_bounds = array<i64: 4, 32, 8>}, {pipeline_mode = #tpu.pipeline_mode<synchronous>, transform_indices = @transform_2, window_bounds = array<i64: 4, 1, 8>}, {pipeline_mode = #tpu.pipeline_mode<synchronous>, transform_indices = @transform_3, window_bounds = array<i64: 4, 32, 8>}, {pipeline_mode = #tpu.pipeline_mode<synchronous>, transform_indices = @transform_4, window_bounds = array<i64: 4, 1, 8>}, {pipeline_mode = #tpu.pipeline_mode<synchronous>, transform_indices = @transform_5, window_bounds = array<i64: 4, 32, 8>}, {pipeline_mode = #tpu.pipeline_mode<synchronous>, transform_indices = @transform_6, window_bounds = array<i64: 4, 1, 8>}, {transform_indices = @transform_7, window_bounds = array<i64: 1, 4, 8, 8>}, {transform_indices = @transform_8, window_bounds = array<i64: 1, 4, 8, 8>}, {transform_indices = @transform_9, window_bounds = array<i64: 1, 4, 8, 8>}]} {
    %c0 = arith.constant 0 : index
    %c0_0 = arith.constant 0 : index
    %c0_1 = arith.constant 0 : index
    %0 = vector.load %arg2[%c0, %c0_0, %c0_1] : memref<1x8x32xf32, #tpu.memory_space<vmem>>, vector<1x8x32xf32>
    %1 = vector.shape_cast %0 : vector<1x8x32xf32> to vector<8x32xf32>
    %c0_2 = arith.constant 0 : index
    %c0_3 = arith.constant 0 : index
    %c0_4 = arith.constant 0 : index
    %2 = vector.load %arg3[%c0_2, %c0_3, %c0_4] : memref<4x32x8xf32, #tpu.memory_space<vmem>>, vector<1x32x8xf32>
    %3 = vector.shape_cast %2 : vector<1x32x8xf32> to vector<32x8xf32>
    %cst = arith.constant dense<0.000000e+00> : vector<8x8xf32>
    %4 = tpu.matmul %1, %3, %cst {dimension_numbers = #tpu.dot_dimension_numbers<[1], [0], [0], [1], [0, 0, 1, 1], [], []>} : vector<8x32xf32>, vector<32x8xf32>, vector<8x8xf32> -> vector<8x8xf32>
    %c0_5 = arith.constant 0 : index
    %c0_6 = arith.constant 0 : index
    %c0_7 = arith.constant 0 : index
    %5 = vector.load %arg4[%c0_5, %c0_6, %c0_7] : memref<4x1x8xf32, #tpu.memory_space<vmem>>, vector<1x1x8xf32>
    %6 = vector.shape_cast %5 : vector<1x1x8xf32> to vector<1x8xf32>
    %7 = vector.broadcast %6 : vector<1x8xf32> to vector<8x8xf32>
    %8 = arith.addf %4, %7 : vector<8x8xf32>
    %c0_8 = arith.constant 0 : index
    %c0_9 = arith.constant 0 : index
    %c0_10 = arith.constant 0 : index
    %c0_11 = arith.constant 0 : index
    %9 = vector.load %arg9[%c0_8, %c0_9, %c0_10, %c0_11] : memref<1x4x8x8xf32, #tpu.memory_space<vmem>>, vector<1x1x8x8xf32>
    %10 = vector.shape_cast %9 : vector<1x1x8x8xf32> to vector<8x8xf32>
    %11 = vector.shape_cast %8 : vector<8x8xf32> to vector<1x1x8x8xf32>
    tpu.vector_store %arg9[%c0_8, %c0_9, %c0_10, %c0_11], %11 {strides = array<i32>} : memref<1x4x8x8xf32, #tpu.memory_space<vmem>>, vector<1x1x8x8xf32>,
    %c0_12 = arith.constant 0 : index
    %c0_13 = arith.constant 0 : index
    %c0_14 = arith.constant 0 : index
    %12 = vector.load %arg5[%c0_12, %c0_13, %c0_14] : memref<4x32x8xf32, #tpu.memory_space<vmem>>, vector<1x32x8xf32>
    %13 = vector.shape_cast %12 : vector<1x32x8xf32> to vector<32x8xf32>
    %cst_15 = arith.constant dense<0.000000e+00> : vector<8x8xf32>
    %14 = tpu.matmul %1, %13, %cst_15 {dimension_numbers = #tpu.dot_dimension_numbers<[1], [0], [0], [1], [0, 0, 1, 1], [], []>} : vector<8x32xf32>, vector<32x8xf32>, vector<8x8xf32> -> vector<8x8xf32>
    %c0_16 = arith.constant 0 : index
    %c0_17 = arith.constant 0 : index
    %c0_18 = arith.constant 0 : index
    %15 = vector.load %arg6[%c0_16, %c0_17, %c0_18] : memref<4x1x8xf32, #tpu.memory_space<vmem>>, vector<1x1x8xf32>
    %16 = vector.shape_cast %15 : vector<1x1x8xf32> to vector<1x8xf32>
    %17 = vector.broadcast %16 : vector<1x8xf32> to vector<8x8xf32>
    %18 = arith.addf %14, %17 : vector<8x8xf32>
    %c0_19 = arith.constant 0 : index
    %c0_20 = arith.constant 0 : index
    %c0_21 = arith.constant 0 : index
    %c0_22 = arith.constant 0 : index
    %19 = vector.load %arg10[%c0_19, %c0_20, %c0_21, %c0_22] : memref<1x4x8x8xf32, #tpu.memory_space<vmem>>, vector<1x1x8x8xf32>
    %20 = vector.shape_cast %19 : vector<1x1x8x8xf32> to vector<8x8xf32>
    %21 = vector.shape_cast %18 : vector<8x8xf32> to vector<1x1x8x8xf32>
    tpu.vector_store %arg10[%c0_19, %c0_20, %c0_21, %c0_22], %21 {strides = array<i32>} : memref<1x4x8x8xf32, #tpu.memory_space<vmem>>, vector<1x1x8x8xf32>,
    %c0_23 = arith.constant 0 : index
    %c0_24 = arith.constant 0 : index
    %c0_25 = arith.constant 0 : index
    %22 = vector.load %arg7[%c0_23, %c0_24, %c0_25] : memref<4x32x8xf32, #tpu.memory_space<vmem>>, vector<1x32x8xf32>
    %23 = vector.shape_cast %22 : vector<1x32x8xf32> to vector<32x8xf32>
    %cst_26 = arith.constant dense<0.000000e+00> : vector<8x8xf32>
    %24 = tpu.matmul %1, %23, %cst_26 {dimension_numbers = #tpu.dot_dimension_numbers<[1], [0], [0], [1], [0, 0, 1, 1], [], []>} : vector<8x32xf32>, vector<32x8xf32>, vector<8x8xf32> -> vector<8x8xf32>
    %c0_27 = arith.constant 0 : index
    %c0_28 = arith.constant 0 : index
    %c0_29 = arith.constant 0 : index
    %25 = vector.load %arg8[%c0_27, %c0_28, %c0_29] : memref<4x1x8xf32, #tpu.memory_space<vmem>>, vector<1x1x8xf32>
    %26 = vector.shape_cast %25 : vector<1x1x8xf32> to vector<1x8xf32>
    %27 = vector.broadcast %26 : vector<1x8xf32> to vector<8x8xf32>
    %28 = arith.addf %24, %27 : vector<8x8xf32>
    %c0_30 = arith.constant 0 : index
    %c0_31 = arith.constant 0 : index
    %c0_32 = arith.constant 0 : index
    %c0_33 = arith.constant 0 : index
    %29 = vector.load %arg11[%c0_30, %c0_31, %c0_32, %c0_33] : memref<1x4x8x8xf32, #tpu.memory_space<vmem>>, vector<1x1x8x8xf32>
    %30 = vector.shape_cast %29 : vector<1x1x8x8xf32> to vector<8x8xf32>
    %31 = vector.shape_cast %28 : vector<8x8xf32> to vector<1x1x8x8xf32>
    tpu.vector_store %arg11[%c0_30, %c0_31, %c0_32, %c0_33], %31 {strides = array<i32>} : memref<1x4x8x8xf32, #tpu.memory_space<vmem>>, vector<1x1x8x8xf32>,
    %c1 = arith.constant 1 : index
    %c0_34 = arith.constant 0 : index
    %c0_35 = arith.constant 0 : index
    %32 = vector.load %arg3[%c1, %c0_34, %c0_35] : memref<4x32x8xf32, #tpu.memory_space<vmem>>, vector<1x32x8xf32>
    %33 = vector.shape_cast %32 : vector<1x32x8xf32> to vector<32x8xf32>
    %cst_36 = arith.constant dense<0.000000e+00> : vector<8x8xf32>
    %34 = tpu.matmul %1, %33, %cst_36 {dimension_numbers = #tpu.dot_dimension_numbers<[1], [0], [0], [1], [0, 0, 1, 1], [], []>} : vector<8x32xf32>, vector<32x8xf32>, vector<8x8xf32> -> vector<8x8xf32>
    %c1_37 = arith.constant 1 : index
    %c0_38 = arith.constant 0 : index
    %c0_39 = arith.constant 0 : index
    %35 = vector.load %arg4[%c1_37, %c0_38, %c0_39] : memref<4x1x8xf32, #tpu.memory_space<vmem>>, vector<1x1x8xf32>
    %36 = vector.shape_cast %35 : vector<1x1x8xf32> to vector<1x8xf32>
    %37 = vector.broadcast %36 : vector<1x8xf32> to vector<8x8xf32>
    %38 = arith.addf %34, %37 : vector<8x8xf32>
    %c0_40 = arith.constant 0 : index
    %c1_41 = arith.constant 1 : index
    %c0_42 = arith.constant 0 : index
    %c0_43 = arith.constant 0 : index
    %39 = vector.load %arg9[%c0_40, %c1_41, %c0_42, %c0_43] : memref<1x4x8x8xf32, #tpu.memory_space<vmem>>, vector<1x1x8x8xf32>
    %40 = vector.shape_cast %39 : vector<1x1x8x8xf32> to vector<8x8xf32>
    %41 = vector.shape_cast %38 : vector<8x8xf32> to vector<1x1x8x8xf32>
    tpu.vector_store %arg9[%c0_40, %c1_41, %c0_42, %c0_43], %41 {strides = array<i32>} : memref<1x4x8x8xf32, #tpu.memory_space<vmem>>, vector<1x1x8x8xf32>,
    %c1_44 = arith.constant 1 : index
    %c0_45 = arith.constant 0 : index
    %c0_46 = arith.constant 0 : index
    %42 = vector.load %arg5[%c1_44, %c0_45, %c0_46] : memref<4x32x8xf32, #tpu.memory_space<vmem>>, vector<1x32x8xf32>
    %43 = vector.shape_cast %42 : vector<1x32x8xf32> to vector<32x8xf32>
    %cst_47 = arith.constant dense<0.000000e+00> : vector<8x8xf32>
    %44 = tpu.matmul %1, %43, %cst_47 {dimension_numbers = #tpu.dot_dimension_numbers<[1], [0], [0], [1], [0, 0, 1, 1], [], []>} : vector<8x32xf32>, vector<32x8xf32>, vector<8x8xf32> -> vector<8x8xf32>
    %c1_48 = arith.constant 1 : index
    %c0_49 = arith.constant 0 : index
    %c0_50 = arith.constant 0 : index
    %45 = vector.load %arg6[%c1_48, %c0_49, %c0_50] : memref<4x1x8xf32, #tpu.memory_space<vmem>>, vector<1x1x8xf32>
    %46 = vector.shape_cast %45 : vector<1x1x8xf32> to vector<1x8xf32>
    %47 = vector.broadcast %46 : vector<1x8xf32> to vector<8x8xf32>
    %48 = arith.addf %44, %47 : vector<8x8xf32>
    %c0_51 = arith.constant 0 : index
    %c1_52 = arith.constant 1 : index
    %c0_53 = arith.constant 0 : index
    %c0_54 = arith.constant 0 : index
    %49 = vector.load %arg10[%c0_51, %c1_52, %c0_53, %c0_54] : memref<1x4x8x8xf32, #tpu.memory_space<vmem>>, vector<1x1x8x8xf32>
    %50 = vector.shape_cast %49 : vector<1x1x8x8xf32> to vector<8x8xf32>
    %51 = vector.shape_cast %48 : vector<8x8xf32> to vector<1x1x8x8xf32>
    tpu.vector_store %arg10[%c0_51, %c1_52, %c0_53, %c0_54], %51 {strides = array<i32>} : memref<1x4x8x8xf32, #tpu.memory_space<vmem>>, vector<1x1x8x8xf32>,
    %c1_55 = arith.constant 1 : index
    %c0_56 = arith.constant 0 : index
    %c0_57 = arith.constant 0 : index
    %52 = vector.load %arg7[%c1_55, %c0_56, %c0_57] : memref<4x32x8xf32, #tpu.memory_space<vmem>>, vector<1x32x8xf32>
    %53 = vector.shape_cast %52 : vector<1x32x8xf32> to vector<32x8xf32>
    %cst_58 = arith.constant dense<0.000000e+00> : vector<8x8xf32>
    %54 = tpu.matmul %1, %53, %cst_58 {dimension_numbers = #tpu.dot_dimension_numbers<[1], [0], [0], [1], [0, 0, 1, 1], [], []>} : vector<8x32xf32>, vector<32x8xf32>, vector<8x8xf32> -> vector<8x8xf32>
    %c1_59 = arith.constant 1 : index
    %c0_60 = arith.constant 0 : index
    %c0_61 = arith.constant 0 : index
    %55 = vector.load %arg8[%c1_59, %c0_60, %c0_61] : memref<4x1x8xf32, #tpu.memory_space<vmem>>, vector<1x1x8xf32>
    %56 = vector.shape_cast %55 : vector<1x1x8xf32> to vector<1x8xf32>
    %57 = vector.broadcast %56 : vector<1x8xf32> to vector<8x8xf32>
    %58 = arith.addf %54, %57 : vector<8x8xf32>
    %c0_62 = arith.constant 0 : index
    %c1_63 = arith.constant 1 : index
    %c0_64 = arith.constant 0 : index
    %c0_65 = arith.constant 0 : index
    %59 = vector.load %arg11[%c0_62, %c1_63, %c0_64, %c0_65] : memref<1x4x8x8xf32, #tpu.memory_space<vmem>>, vector<1x1x8x8xf32>
    %60 = vector.shape_cast %59 : vector<1x1x8x8xf32> to vector<8x8xf32>
    %61 = vector.shape_cast %58 : vector<8x8xf32> to vector<1x1x8x8xf32>
    tpu.vector_store %arg11[%c0_62, %c1_63, %c0_64, %c0_65], %61 {strides = array<i32>} : memref<1x4x8x8xf32, #tpu.memory_space<vmem>>, vector<1x1x8x8xf32>,
    %c2 = arith.constant 2 : index
    %c0_66 = arith.constant 0 : index
    %c0_67 = arith.constant 0 : index
    %62 = vector.load %arg3[%c2, %c0_66, %c0_67] : memref<4x32x8xf32, #tpu.memory_space<vmem>>, vector<1x32x8xf32>
    %63 = vector.shape_cast %62 : vector<1x32x8xf32> to vector<32x8xf32>
    %cst_68 = arith.constant dense<0.000000e+00> : vector<8x8xf32>
    %64 = tpu.matmul %1, %63, %cst_68 {dimension_numbers = #tpu.dot_dimension_numbers<[1], [0], [0], [1], [0, 0, 1, 1], [], []>} : vector<8x32xf32>, vector<32x8xf32>, vector<8x8xf32> -> vector<8x8xf32>
    %c2_69 = arith.constant 2 : index
    %c0_70 = arith.constant 0 : index
    %c0_71 = arith.constant 0 : index
    %65 = vector.load %arg4[%c2_69, %c0_70, %c0_71] : memref<4x1x8xf32, #tpu.memory_space<vmem>>, vector<1x1x8xf32>
    %66 = vector.shape_cast %65 : vector<1x1x8xf32> to vector<1x8xf32>
    %67 = vector.broadcast %66 : vector<1x8xf32> to vector<8x8xf32>
    %68 = arith.addf %64, %67 : vector<8x8xf32>
    %c0_72 = arith.constant 0 : index
    %c2_73 = arith.constant 2 : index
    %c0_74 = arith.constant 0 : index
    %c0_75 = arith.constant 0 : index
    %69 = vector.load %arg9[%c0_72, %c2_73, %c0_74, %c0_75] : memref<1x4x8x8xf32, #tpu.memory_space<vmem>>, vector<1x1x8x8xf32>
    %70 = vector.shape_cast %69 : vector<1x1x8x8xf32> to vector<8x8xf32>
    %71 = vector.shape_cast %68 : vector<8x8xf32> to vector<1x1x8x8xf32>
    tpu.vector_store %arg9[%c0_72, %c2_73, %c0_74, %c0_75], %71 {strides = array<i32>} : memref<1x4x8x8xf32, #tpu.memory_space<vmem>>, vector<1x1x8x8xf32>,
    %c2_76 = arith.constant 2 : index
    %c0_77 = arith.constant 0 : index
    %c0_78 = arith.constant 0 : index
    %72 = vector.load %arg5[%c2_76, %c0_77, %c0_78] : memref<4x32x8xf32, #tpu.memory_space<vmem>>, vector<1x32x8xf32>
    %73 = vector.shape_cast %72 : vector<1x32x8xf32> to vector<32x8xf32>
    %cst_79 = arith.constant dense<0.000000e+00> : vector<8x8xf32>
    %74 = tpu.matmul %1, %73, %cst_79 {dimension_numbers = #tpu.dot_dimension_numbers<[1], [0], [0], [1], [0, 0, 1, 1], [], []>} : vector<8x32xf32>, vector<32x8xf32>, vector<8x8xf32> -> vector<8x8xf32>
    %c2_80 = arith.constant 2 : index
    %c0_81 = arith.constant 0 : index
    %c0_82 = arith.constant 0 : index
    %75 = vector.load %arg6[%c2_80, %c0_81, %c0_82] : memref<4x1x8xf32, #tpu.memory_space<vmem>>, vector<1x1x8xf32>
    %76 = vector.shape_cast %75 : vector<1x1x8xf32> to vector<1x8xf32>
    %77 = vector.broadcast %76 : vector<1x8xf32> to vector<8x8xf32>
    %78 = arith.addf %74, %77 : vector<8x8xf32>
    %c0_83 = arith.constant 0 : index
    %c2_84 = arith.constant 2 : index
    %c0_85 = arith.constant 0 : index
    %c0_86 = arith.constant 0 : index
    %79 = vector.load %arg10[%c0_83, %c2_84, %c0_85, %c0_86] : memref<1x4x8x8xf32, #tpu.memory_space<vmem>>, vector<1x1x8x8xf32>
    %80 = vector.shape_cast %79 : vector<1x1x8x8xf32> to vector<8x8xf32>
    %81 = vector.shape_cast %78 : vector<8x8xf32> to vector<1x1x8x8xf32>
    tpu.vector_store %arg10[%c0_83, %c2_84, %c0_85, %c0_86], %81 {strides = array<i32>} : memref<1x4x8x8xf32, #tpu.memory_space<vmem>>, vector<1x1x8x8xf32>,
    %c2_87 = arith.constant 2 : index
    %c0_88 = arith.constant 0 : index
    %c0_89 = arith.constant 0 : index
    %82 = vector.load %arg7[%c2_87, %c0_88, %c0_89] : memref<4x32x8xf32, #tpu.memory_space<vmem>>, vector<1x32x8xf32>
    %83 = vector.shape_cast %82 : vector<1x32x8xf32> to vector<32x8xf32>
    %cst_90 = arith.constant dense<0.000000e+00> : vector<8x8xf32>
    %84 = tpu.matmul %1, %83, %cst_90 {dimension_numbers = #tpu.dot_dimension_numbers<[1], [0], [0], [1], [0, 0, 1, 1], [], []>} : vector<8x32xf32>, vector<32x8xf32>, vector<8x8xf32> -> vector<8x8xf32>
    %c2_91 = arith.constant 2 : index
    %c0_92 = arith.constant 0 : index
    %c0_93 = arith.constant 0 : index
    %85 = vector.load %arg8[%c2_91, %c0_92, %c0_93] : memref<4x1x8xf32, #tpu.memory_space<vmem>>, vector<1x1x8xf32>
    %86 = vector.shape_cast %85 : vector<1x1x8xf32> to vector<1x8xf32>
    %87 = vector.broadcast %86 : vector<1x8xf32> to vector<8x8xf32>
    %88 = arith.addf %84, %87 : vector<8x8xf32>
    %c0_94 = arith.constant 0 : index
    %c2_95 = arith.constant 2 : index
    %c0_96 = arith.constant 0 : index
    %c0_97 = arith.constant 0 : index
    %89 = vector.load %arg11[%c0_94, %c2_95, %c0_96, %c0_97] : memref<1x4x8x8xf32, #tpu.memory_space<vmem>>, vector<1x1x8x8xf32>
    %90 = vector.shape_cast %89 : vector<1x1x8x8xf32> to vector<8x8xf32>
    %91 = vector.shape_cast %88 : vector<8x8xf32> to vector<1x1x8x8xf32>
    tpu.vector_store %arg11[%c0_94, %c2_95, %c0_96, %c0_97], %91 {strides = array<i32>} : memref<1x4x8x8xf32, #tpu.memory_space<vmem>>, vector<1x1x8x8xf32>,
    %c3 = arith.constant 3 : index
    %c0_98 = arith.constant 0 : index
    %c0_99 = arith.constant 0 : index
    %92 = vector.load %arg3[%c3, %c0_98, %c0_99] : memref<4x32x8xf32, #tpu.memory_space<vmem>>, vector<1x32x8xf32>
    %93 = vector.shape_cast %92 : vector<1x32x8xf32> to vector<32x8xf32>
    %cst_100 = arith.constant dense<0.000000e+00> : vector<8x8xf32>
    %94 = tpu.matmul %1, %93, %cst_100 {dimension_numbers = #tpu.dot_dimension_numbers<[1], [0], [0], [1], [0, 0, 1, 1], [], []>} : vector<8x32xf32>, vector<32x8xf32>, vector<8x8xf32> -> vector<8x8xf32>
    %c3_101 = arith.constant 3 : index
    %c0_102 = arith.constant 0 : index
    %c0_103 = arith.constant 0 : index
    %95 = vector.load %arg4[%c3_101, %c0_102, %c0_103] : memref<4x1x8xf32, #tpu.memory_space<vmem>>, vector<1x1x8xf32>
    %96 = vector.shape_cast %95 : vector<1x1x8xf32> to vector<1x8xf32>
    %97 = vector.broadcast %96 : vector<1x8xf32> to vector<8x8xf32>
    %98 = arith.addf %94, %97 : vector<8x8xf32>
    %c0_104 = arith.constant 0 : index
    %c3_105 = arith.constant 3 : index
    %c0_106 = arith.constant 0 : index
    %c0_107 = arith.constant 0 : index
    %99 = vector.load %arg9[%c0_104, %c3_105, %c0_106, %c0_107] : memref<1x4x8x8xf32, #tpu.memory_space<vmem>>, vector<1x1x8x8xf32>
    %100 = vector.shape_cast %99 : vector<1x1x8x8xf32> to vector<8x8xf32>
    %101 = vector.shape_cast %98 : vector<8x8xf32> to vector<1x1x8x8xf32>
    tpu.vector_store %arg9[%c0_104, %c3_105, %c0_106, %c0_107], %101 {strides = array<i32>} : memref<1x4x8x8xf32, #tpu.memory_space<vmem>>, vector<1x1x8x8xf32>,
    %c3_108 = arith.constant 3 : index
    %c0_109 = arith.constant 0 : index
    %c0_110 = arith.constant 0 : index
    %102 = vector.load %arg5[%c3_108, %c0_109, %c0_110] : memref<4x32x8xf32, #tpu.memory_space<vmem>>, vector<1x32x8xf32>
    %103 = vector.shape_cast %102 : vector<1x32x8xf32> to vector<32x8xf32>
    %cst_111 = arith.constant dense<0.000000e+00> : vector<8x8xf32>
    %104 = tpu.matmul %1, %103, %cst_111 {dimension_numbers = #tpu.dot_dimension_numbers<[1], [0], [0], [1], [0, 0, 1, 1], [], []>} : vector<8x32xf32>, vector<32x8xf32>, vector<8x8xf32> -> vector<8x8xf32>
    %c3_112 = arith.constant 3 : index
    %c0_113 = arith.constant 0 : index
    %c0_114 = arith.constant 0 : index
    %105 = vector.load %arg6[%c3_112, %c0_113, %c0_114] : memref<4x1x8xf32, #tpu.memory_space<vmem>>, vector<1x1x8xf32>
    %106 = vector.shape_cast %105 : vector<1x1x8xf32> to vector<1x8xf32>
    %107 = vector.broadcast %106 : vector<1x8xf32> to vector<8x8xf32>
    %108 = arith.addf %104, %107 : vector<8x8xf32>
    %c0_115 = arith.constant 0 : index
    %c3_116 = arith.constant 3 : index
    %c0_117 = arith.constant 0 : index
    %c0_118 = arith.constant 0 : index
    %109 = vector.load %arg10[%c0_115, %c3_116, %c0_117, %c0_118] : memref<1x4x8x8xf32, #tpu.memory_space<vmem>>, vector<1x1x8x8xf32>
    %110 = vector.shape_cast %109 : vector<1x1x8x8xf32> to vector<8x8xf32>
    %111 = vector.shape_cast %108 : vector<8x8xf32> to vector<1x1x8x8xf32>
    tpu.vector_store %arg10[%c0_115, %c3_116, %c0_117, %c0_118], %111 {strides = array<i32>} : memref<1x4x8x8xf32, #tpu.memory_space<vmem>>, vector<1x1x8x8xf32>,
    %c3_119 = arith.constant 3 : index
    %c0_120 = arith.constant 0 : index
    %c0_121 = arith.constant 0 : index
    %112 = vector.load %arg7[%c3_119, %c0_120, %c0_121] : memref<4x32x8xf32, #tpu.memory_space<vmem>>, vector<1x32x8xf32>
    %113 = vector.shape_cast %112 : vector<1x32x8xf32> to vector<32x8xf32>
    %cst_122 = arith.constant dense<0.000000e+00> : vector<8x8xf32>
    %114 = tpu.matmul %1, %113, %cst_122 {dimension_numbers = #tpu.dot_dimension_numbers<[1], [0], [0], [1], [0, 0, 1, 1], [], []>} : vector<8x32xf32>, vector<32x8xf32>, vector<8x8xf32> -> vector<8x8xf32>
    %c3_123 = arith.constant 3 : index
    %c0_124 = arith.constant 0 : index
    %c0_125 = arith.constant 0 : index
    %115 = vector.load %arg8[%c3_123, %c0_124, %c0_125] : memref<4x1x8xf32, #tpu.memory_space<vmem>>, vector<1x1x8xf32>
    %116 = vector.shape_cast %115 : vector<1x1x8xf32> to vector<1x8xf32>
    %117 = vector.broadcast %116 : vector<1x8xf32> to vector<8x8xf32>
    %118 = arith.addf %114, %117 : vector<8x8xf32>
    %c0_126 = arith.constant 0 : index
    %c3_127 = arith.constant 3 : index
    %c0_128 = arith.constant 0 : index
    %c0_129 = arith.constant 0 : index
    %119 = vector.load %arg11[%c0_126, %c3_127, %c0_128, %c0_129] : memref<1x4x8x8xf32, #tpu.memory_space<vmem>>, vector<1x1x8x8xf32>
    %120 = vector.shape_cast %119 : vector<1x1x8x8xf32> to vector<8x8xf32>
    %121 = vector.shape_cast %118 : vector<8x8xf32> to vector<1x1x8x8xf32>
    tpu.vector_store %arg11[%c0_126, %c3_127, %c0_128, %c0_129], %121 {strides = array<i32>} : memref<1x4x8x8xf32, #tpu.memory_space<vmem>>, vector<1x1x8x8xf32>,
    return
  }
  func.func @transform_0(%arg0: i32, %arg1: i32) -> (i32, i32, i32) {
    %c0_i32 = arith.constant 0 : i32
    %c0_i32_0 = arith.constant 0 : i32
    return %arg0, %arg1, %c0_i32 : i32, i32, i32
  }
  func.func @transform_1(%arg0: i32, %arg1: i32) -> (i32, i32, i32) {
    %c0_i32 = arith.constant 0 : i32
    %c0_i32_0 = arith.constant 0 : i32
    %c0_i32_1 = arith.constant 0 : i32
    %c0_i32_2 = arith.constant 0 : i32
    return %c0_i32, %c0_i32_0, %c0_i32_1 : i32, i32, i32
  }
  func.func @transform_2(%arg0: i32, %arg1: i32) -> (i32, i32, i32) {
    %c0_i32 = arith.constant 0 : i32
    %c0_i32_0 = arith.constant 0 : i32
    %c0_i32_1 = arith.constant 0 : i32
    %c0_i32_2 = arith.constant 0 : i32
    return %c0_i32, %c0_i32_0, %c0_i32_1 : i32, i32, i32
  }
  func.func @transform_3(%arg0: i32, %arg1: i32) -> (i32, i32, i32) {
    %c0_i32 = arith.constant 0 : i32
    %c0_i32_0 = arith.constant 0 : i32
    %c0_i32_1 = arith.constant 0 : i32
    %c0_i32_2 = arith.constant 0 : i32
    return %c0_i32, %c0_i32_0, %c0_i32_1 : i32, i32, i32
  }
  func.func @transform_4(%arg0: i32, %arg1: i32) -> (i32, i32, i32) {
    %c0_i32 = arith.constant 0 : i32
    %c0_i32_0 = arith.constant 0 : i32
    %c0_i32_1 = arith.constant 0 : i32
    %c0_i32_2 = arith.constant 0 : i32
    return %c0_i32, %c0_i32_0, %c0_i32_1 : i32, i32, i32
  }
  func.func @transform_5(%arg0: i32, %arg1: i32) -> (i32, i32, i32) {
    %c0_i32 = arith.constant 0 : i32
    %c0_i32_0 = arith.constant 0 : i32
    %c0_i32_1 = arith.constant 0 : i32
    %c0_i32_2 = arith.constant 0 : i32
    return %c0_i32, %c0_i32_0, %c0_i32_1 : i32, i32, i32
  }
  func.func @transform_6(%arg0: i32, %arg1: i32) -> (i32, i32, i32) {
    %c0_i32 = arith.constant 0 : i32
    %c0_i32_0 = arith.constant 0 : i32
    %c0_i32_1 = arith.constant 0 : i32
    %c0_i32_2 = arith.constant 0 : i32
    return %c0_i32, %c0_i32_0, %c0_i32_1 : i32, i32, i32
  }
  func.func @transform_7(%arg0: i32, %arg1: i32) -> (i32, i32, i32, i32) {
    %c0_i32 = arith.constant 0 : i32
    %c0_i32_0 = arith.constant 0 : i32
    %c0_i32_1 = arith.constant 0 : i32
    return %arg0, %c0_i32, %arg1, %c0_i32_0 : i32, i32, i32, i32
  }
  func.func @transform_8(%arg0: i32, %arg1: i32) -> (i32, i32, i32, i32) {
    %c0_i32 = arith.constant 0 : i32
    %c0_i32_0 = arith.constant 0 : i32
    %c0_i32_1 = arith.constant 0 : i32
    return %arg0, %c0_i32, %arg1, %c0_i32_0 : i32, i32, i32, i32
  }
  func.func @transform_9(%arg0: i32, %arg1: i32) -> (i32, i32, i32, i32) {
    %c0_i32 = arith.constant 0 : i32
    %c0_i32_0 = arith.constant 0 : i32
    %c0_i32_1 = arith.constant 0 : i32
    return %arg0, %c0_i32, %arg1, %c0_i32_0 : i32, i32, i32, i32
  }
}

</mosaic_0001>

<bundles_post_ra>
// kernel: tpu_custom_call.1
= control target key start
LH: loop header
LB: loop body
LE: loop exit
PB: predicated region body
PF: predicated region fallthrough
CT: control target
= control target key end

     0   :  { %s2717_s0 = inlined_call_operand.vmem [shape: f32[2,8,32], index: 0, kind: input, shape index: {}]   ;;  %s2718_s1 = inlined_call_operand.vmem [shape: f32[4,32,8], index: 1, kind: input, shape index: {}]   ;;  %s2719_s2 = inlined_call_operand.vmem [shape: f32[4,1,8], index: 2, kind: input, shape index: {}]   ;;  %s2720_s3 = inlined_call_operand.vmem [shape: f32[4,32,8], index: 3, kind: input, shape index: {}]   ;;  %s2721_s4 = inlined_call_operand.vmem [shape: f32[4,1,8], index: 4, kind: input, shape index: {}]   ;;  %s2722_s5 = inlined_call_operand.vmem [shape: f32[4,32,8], index: 5, kind: input, shape index: {}]   ;;  %s2723_s6 = inlined_call_operand.vmem [shape: f32[4,1,8], index: 6, kind: input, shape index: {}]   ;;  %s2724_s7 = inlined_call_operand.hbm [shape: f32[2,4,8,8], index: 7, kind: output, shape index: {0}]   ;;  %s2725_s8 = inlined_call_operand.hbm [shape: f32[2,4,8,8], index: 8, kind: output, shape index: {1}]   ;;  %s2726_s9 = inlined_call_operand.hbm [shape: f32[2,4,8,8], index: 9, kind: output, shape index: {2}]  }
   0x1   :  { %2732 = sst [smem:[#allocation10_spill]] %s2717_s0 }
   0x2   :  { %2733 = sst [smem:[#allocation11_spill]] %s2718_s1 }
   0x3   :  { %2734 = sst [smem:[#allocation12_spill]] %s2719_s2 }
   0x4   :  { %15 = vsyncpa [#allocation3], 0 }
   0x5   :  { %17 = vsyncpa [#allocation3 + $0x1], 0 }
   0x6   :  { %18 = vsyncpa [#allocation5], 0 }
   0x7   :  { %20 = vsyncpa [#allocation5 + $0x1], 0  ;;  %s2224_s30 = smov 0   ;;  %s2226_s10 = smov 0  }
   0x8   :  { %s2228_s11 = smov 0   ;;  %s2230_s12 = smov 0  }
   0x9   :  { %s2232_s13 = smov 0   ;;  %s2234_s14 = smov 0  }
   0xa LB: > { %s2728_s15 = sadd.s32 4294967295, %s2164_s14   ;;  %s2727_s16 = sadd.s32 4294967294, %s2164_s14   ;;  %s2164_s14 = sphi %s2234_s14, %s26_s14   ;;  %s2160_s13 = sphi %s2232_s13, %s2750_s13   ;;  %s2156_s12 = sphi %s2230_s12, %s2749_s12   ;;  %s2152_s11 = sphi %s2228_s11, %s2748_s11   ;;  %s2148_s10 = sphi %s2226_s10, %s2747_s10   ;;  %s2144_s30 = sphi %s2224_s30, %s2746_s30  }
   0xb   : > { %s38_s17 = sadd.s32 1, %s2160_s13  ;;  %s201_s18 = sadd.s32 1, %s2152_s11 }
   0xc   : > { %p40_p0 = scmp.ge.s32.totalorder %s38_s17, 2  ;;  %p211_p1 = scmp.ne.s32.totalorder %s2152_s11, %s2148_s10 }
   0xd   : > { %p212_p2 = scmp.eq.s32.totalorder %s2728_s15, 1  ;;  %p217_p3 = scmp.ne.s32.totalorder %s2148_s10, %s2144_s30 }
   0xe   : > { %s2752_s17 = smov (%p40_p0, %s38_s17), 0  ;;  %p218_p5 = scmp.eq.s32.totalorder %s2727_s16, 1 }
   0xf   : > { %2735 = sst [smem:[#allocation9_spill]] %s2752_s17  ;;  %p2266_p4 = por %p212_p2, %p211_p1 }
  0x10   : > { %s196_s20 = ssub.s32 %s2160_s13, %s2752_s17  ;;  %p1595_p6 = scmp.ge.s32.totalorder %s2164_s14, 1 }
  0x11   : > { %p199_p7 = scmp.eq.s32.totalorder %s196_s20, 0  ;;  %p2275_p8 = por %p218_p5, %p217_p3 }
  0x12   : > { %p320_p9 = scmp.lt.s32.totalorder %s2164_s14, 3 }
  0x13   : > { %s2281_s22 = scalar_select %p199_p7, %s2152_s11, %s201_s18  }
  0x14   : > { %p321_p10 = pnand %p1595_p6, %p320_p9 }
  0x15   : > { %s2738_s1 = sld [smem:[#allocation11_spill]] (!%p321_p10)  ;;  %v463_v2 = vld [vmem:[%s2720_s3] sm:$0xff] (!%p321_p10)  ;;  %v2166_v3 = vmov (!%p321_p10), 0.0|0.0   ;;  %v464_v5 = vld [vmem:[%s2720_s3 + $0x8] sm:$0xff] (!%p321_p10)  ;;  %p368_p11 = scmp.lt.s32.totalorder (!%p321_p10), %s2156_s12, 1  ;;  %v465_v9 = vld [vmem:[%s2720_s3 + $0x10] sm:$0xff] (!%p321_p10) }
  0x16   : > { %324 = sbr.rel (%p321_p10) target bundleno = 347 (0x15b), region = 48  ;;  %1884 = vmatprep.subr.bf16.mxu0 (!%p321_p10), %v2166_v3  ;;  %1890 = vmatprep.subr.bf16.mxu1 (!%p321_p10), %v2166_v3  ;;  %v1891_v8 = vpack.c.bf16 (!%p321_p10), %v464_v5, %v463_v2  ;;  %v466_v10 = vld [vmem:[%s2720_s3 + $0x18] sm:$0xff] (!%p321_p10)  ;;  %vm2167_vm0 = vmmov (!%p321_p10), 0   ;;  %v2168_v11 = vmov (!%p321_p10), 0.0   ;;  %v545_v14 = vld [vmem:[%s2722_s5] sm:$0xff] (!%p321_p10)  ;;  %v546_v15 = vld [vmem:[%s2722_s5 + $0x8] sm:$0xff] (!%p321_p10) }
  0x17   : > { %1760 = vmatprep.mubr.msk.f32.mxu0 (!%p321_p10), %vm2167_vm0, %v2168_v11  ;;  %1771 = vmatprep.mubr.msk.f32.mxu1 (!%p321_p10), %vm2167_vm0, %v2168_v11  ;;  %v1894_v13 = vpack.c.bf16 (!%p321_p10), %v466_v10, %v465_v9  ;;  %s2739_s0 = sld [smem:[#allocation10_spill]] (!%p321_p10)  ;;  %vm387_vm1 = vcmask (!%p321_p10), 261120   ;;  %v1897_v19 = vpack.c.bf16 (!%p321_p10), %v546_v15, %v545_v14  ;;  %v547_v21 = vld [vmem:[%s2722_s5 + $0x10] sm:$0xff] (!%p321_p10)  ;;  %v548_v22 = vld [vmem:[%s2722_s5 + $0x18] sm:$0xff] (!%p321_p10)  ;;  %v1614_v27 = vld [vmem:[%s2720_s3 + $0x20] sm:$0xff] (!%p321_p10)  ;;  %s2740_s2 = sld [smem:[#allocation12_spill]] (!%p321_p10) }
  0x18   : > { %1892 = vmatpush3.bf16.msra.mxu1 (!%p321_p10), %v1891_v8  ;;  %v1900_v25 = vpack.c.bf16 (!%p321_p10), %v548_v22, %v547_v21  ;;  %v1615_v28 = vld [vmem:[%s2720_s3 + $0x28] sm:$0xff] (!%p321_p10)  ;;  %v1622_v29 = vld [vmem:[%s2722_s5 + $0x20] sm:$0xff] (!%p321_p10)  ;;  %v1616_v33 = vld [vmem:[%s2720_s3 + $0x30] sm:$0xff] (!%p321_p10)  ;;  %vm461_vm2 = vcmask (!%p321_p10), 64512   ;;  %s2563_s27 = sshll.u32 (!%p321_p10), %s2156_s12, 9 }
  0x19   : > { %1893 = vmatprep.subr.bf16.mxu1 (!%p321_p10), %v2166_v3  ;;  %v1623_v30 = vld [vmem:[%s2722_s5 + $0x28] sm:$0xff] (!%p321_p10)  ;;  %v1909_v31 = vpack.c.bf16 (!%p321_p10), %v1615_v28, %v1614_v27  ;;  %v1617_v34 = vld [vmem:[%s2720_s3 + $0x38] sm:$0xff] (!%p321_p10)  ;;  %v1624_v35 = vld [vmem:[%s2722_s5 + $0x30] sm:$0xff] (!%p321_p10)  ;;  %s2571_s15 = scalar_lea.hbm (!%p321_p10), %s2724_s7, %s2563_s27 }
  0x1a   : > { %v1915_v32 = vpack.c.bf16 (!%p321_p10), %v1623_v30, %v1622_v29  ;;  %v1625_v36 = vld [vmem:[%s2722_s5 + $0x38] sm:$0xff] (!%p321_p10)  ;;  %v1912_v37 = vpack.c.bf16 (!%p321_p10), %v1617_v34, %v1616_v33  ;;  %v1638_v41 = vld [vmem:[%s2720_s3 + $0x40] sm:$0xff] (!%p321_p10)  ;;  %v1639_v42 = vld [vmem:[%s2720_s3 + $0x48] sm:$0xff] (!%p321_p10) }
  0x1b   : > { %v376_v0 = vld [vmem:[%s2738_s1] sm:$0xff] (!%p321_p10)  ;;  %v377_v1 = vld [vmem:[%s2738_s1 + $0x8] sm:$0xff] (!%p321_p10)  ;;  %v378_v6 = vld [vmem:[%s2738_s1 + $0x10] sm:$0xff] (!%p321_p10)  ;;  %v1918_v38 = vpack.c.bf16 (!%p321_p10), %v1625_v36, %v1624_v35  ;;  %v1927_v44 = vpack.c.bf16 (!%p321_p10), %v1639_v42, %v1638_v41 }
  0x1c   : > { %v1885_v4 = vpack.c.bf16 (!%p321_p10), %v377_v1, %v376_v0  ;;  %v379_v7 = vld [vmem:[%s2738_s1 + $0x18] sm:$0xff] (!%p321_p10)  ;;  %v1606_v16 = vld [vmem:[%s2738_s1 + $0x20] sm:$0xff] (!%p321_p10)  ;;  %v1607_v17 = vld [vmem:[%s2738_s1 + $0x28] sm:$0xff] (!%p321_p10)  ;;  %1895 = vmatpush3.bf16.msra.mxu1 (!%p321_p10), %v1894_v13 }
  0x1d   : > { %v1888_v12 = vpack.c.bf16 %v379_v7, %v378_v6  ;;  %s369_s29 = scalar_select %p368_p11, %s2156_s12, 1  ;;  %v1903_v20 = vpack.c.bf16 %v1607_v17, %v1606_v16  ;;  %1902 = vmatprep.subr.bf16.mxu1 %v2166_v3  ;;  %v1608_v23 = vld [vmem:[%s2738_s1 + $0x30] sm:$0xff]  ;;  %v1609_v24 = vld [vmem:[%s2738_s1 + $0x38] sm:$0xff]  ;;  %v1630_v39 = vld [vmem:[%s2738_s1 + $0x40] sm:$0xff] }
  0x1e   : > { %1886 = vmatpush3.bf16.msra.mxu0 %v1885_v4  ;;  %v1906_v26 = vpack.c.bf16 %v1609_v24, %v1608_v23  ;;  %v1631_v40 = vld [vmem:[%s2738_s1 + $0x48] sm:$0xff]  ;;  %v1632_v45 = vld [vmem:[%s2738_s1 + $0x50] sm:$0xff]  ;;  %v1633_v46 = vld [vmem:[%s2738_s1 + $0x58] sm:$0xff] }
  0x1f   : > { %1887 = vmatprep.subr.bf16.mxu0 %v2166_v3  ;;  %s1599_s24 = sshll.u32 %s369_s29, 3  ;;  %v1921_v43 = vpack.c.bf16 %v1631_v40, %v1630_v39  ;;  %v1640_v47 = vld [vmem:[%s2720_s3 + $0x50] sm:$0xff]  ;;  %v1641_v48 = vld [vmem:[%s2720_s3 + $0x58] sm:$0xff]  ;;  %v1924_v49 = vpack.c.bf16 %v1633_v46, %v1632_v45  ;;  %v1646_v51 = vld [vmem:[%s2722_s5 + $0x40] sm:$0xff]  ;;  %s351_s29 = sand.u32 1, %s2148_s10  }
  0x20   : > { %s374_s18 = scalar_lea.vmem %s2739_s0, %s1599_s24  ;;  %v1930_v50 = vpack.c.bf16 %v1641_v48, %v1640_v47  ;;  %v1647_v52 = vld [vmem:[%s2722_s5 + $0x48] sm:$0xff]  ;;  %v1654_v53 = vld [vmem:[%s2738_s1 + $0x60] sm:$0xff]  ;;  %v1648_v57 = vld [vmem:[%s2722_s5 + $0x50] sm:$0xff]  ;;  %s1596_s20 = sshll.u32 %s351_s29, 5 }
  0x21   : > { %v2332_v18 = vld [vmem:[%s374_s18] sm:$0xff]  ;;  %v1655_v54 = vld [vmem:[%s2738_s1 + $0x68] sm:$0xff]  ;;  %v1933_v55 = vpack.c.bf16 %v1647_v52, %v1646_v51  ;;  %v1649_v58 = vld [vmem:[%s2722_s5 + $0x58] sm:$0xff]  ;;  %s2515_s24 = scalar_lea.vmem [#allocation2], %s1596_s20  ;;  %s2519_s25 = scalar_lea.vmem [#allocation4], %s1596_s20 }
  0x22   : > { %1889 = vmatpush3.bf16.msra.mxu0 %v1888_v12  ;;  %1772 = vmatmul.mubr.msk.f32.vlgmr.msra.gmra.mrb[0].mxu1 %vm387_vm1, %v2332_v18  ;;  %v1939_v56 = vpack.c.bf16 %v1655_v54, %v1654_v53  ;;  %v1656_v59 = vld [vmem:[%s2738_s1 + $0x70] sm:$0xff]  ;;  %v1657_v60 = vld [vmem:[%s2738_s1 + $0x78] sm:$0xff]  ;;  %v1936_v61 = vpack.c.bf16 %v1649_v58, %v1648_v57  ;;  %v1662_v63 = vld [vmem:[%s2720_s3 + $0x60] sm:$0xff]  ;;  %s2529_s16 = scalar_lea.vmem [#allocation6], %s1596_s20  ;;  %s1417_s23 = sshll.u32 %s2515_s24, 4  ;;  %s2565_s23 = int_to_ptr.vmem [resolvable:$true] %s1417_s23 }
  0x23   : > { %1896 = vmatprep.subr.bf16.mxu0 %v2166_v3  ;;  %1904 = vmatpush3.bf16.msra.mxu1 %v1903_v20  ;;  %v1942_v62 = vpack.c.bf16 %v1657_v60, %v1656_v59  ;;  %v1663_v0 = vld [vmem:[%s2720_s3 + $0x68] sm:$0xff]  ;;  %v1670_v1 = vld [vmem:[%s2722_s5 + $0x60] sm:$0xff]  ;;  %v1664_v6 = vld [vmem:[%s2720_s3 + $0x70] sm:$0xff]  ;;  %s2580_s17 = scalar_lea.sflag [#allocation3], %s351_s29  ;;  %s2026_s26 = scalar_lea.vmem %s2565_s23, 512 }
  0x24   : > { %1905 = vmatprep.subr.bf16.mxu1 %v2166_v3  ;;  %1793 = vmatprep.mubr.msk.f32.mxu1 %vm2167_vm0, %v2168_v11  ;;  %v1671_v2 = vld [vmem:[%s2722_s5 + $0x68] sm:$0xff]  ;;  %v1945_v4 = vpack.c.bf16 %v1663_v0, %v1662_v63  ;;  %v1665_v7 = vld [vmem:[%s2720_s3 + $0x78] sm:$0xff]  ;;  %v1672_v8 = vld [vmem:[%s2722_s5 + $0x70] sm:$0xff]  ;;  %p2027_p12 = scmp.ne.s32.totalorder %s2565_s23, %s2026_s26  ;;  %s2169_s20 = smov [#allocation2]  }
  0x25   : > { %1761 = vmatmul.mubr.msk.f32.vlgmr.msra.gmra.mrb[0].mxu0 %vm387_vm1, %v2332_v18  ;;  %v1951_v5 = vpack.c.bf16 %v1671_v2, %v1670_v1  ;;  %v1673_v9 = vld [vmem:[%s2722_s5 + $0x78] sm:$0xff]  ;;  %v1948_v10 = vpack.c.bf16 %v1665_v7, %v1664_v6  ;;  %v1602_v13 = vld [vmem:[%s2721_s4] ss:$0 sm:$0xff]  ;;  %v1611_v20 = vld [vmem:[%s2740_s2 + $0x1] ss:$0 sm:$0xff]  ;;  %s2030_s0 = sshll.u32 %s2169_s20, 4  ;;  %s2031_s0 = int_to_ptr.vmem [resolvable:$false] %s2030_s0 }
  0x26   : > { %1898 = vmatpush3.bf16.msra.mxu0 %v1897_v19  ;;  %1782 = vmatprep.mubr.msk.f32.mxu0 %vm2167_vm0, %v2168_v11  ;;  %v1954_v12 = vpack.c.bf16 %v1673_v9, %v1672_v8  ;;  %v1619_v27 = vld [vmem:[%s2721_s4 + $0x1] ss:$0 sm:$0xff]  ;;  %v1635_v35 = vld [vmem:[%s2740_s2 + $0x2] ss:$0 sm:$0xff]  ;;  %p2028_p13 = pnand %p2027_p12, %p2266_p4  ;;  %s2032_s1 = scalar_lea.vmem %s2031_s0, 1024 }
  0x27   : > { %1899 = vmatprep.subr.bf16.mxu0 %v2166_v3  ;;  %1907 = vmatpush3.bf16.msra.mxu1 %v1906_v26  ;;  %v1627_v28 = vld [vmem:[%s2723_s6 + $0x1] ss:$0 sm:$0xff]  ;;  %v1643_v36 = vld [vmem:[%s2721_s4 + $0x2] ss:$0 sm:$0xff]  ;;  %p2033_p1 = scmp.lt.s32.totalorder %s2565_s23, %s2031_s0  ;;  %p2034_p2 = scmp.lt.s32.totalorder %s2032_s1, %s2026_s26 }
  0x28   : > { %1914 = vmatprep.subr.bf16.mxu1 %v2166_v3  ;;  %p2029_p0 = pneg %p2028_p13 }
  0x29   : > { %p2035_p3 = por %p2034_p2, %p2033_p1 }
  0x2a   : > { %1901 = vmatpush3.bf16.msra.mxu0 %v1900_v25  ;;  %1794 = vmatmul.mubr.msk.f32.vlgmr.msra.gmra.mrb[2].mxu1 %vm387_vm1, %v2332_v18 }
  0x2b   : > { %1908 = vmatprep.subr.bf16.mxu0 %v2166_v3  ;;  %1916 = vmatpush3.bf16.msra.mxu1 %v1915_v32  ;;  %p2036_p5 = pnand %p2035_p3, %p2029_p0 }
  0x2c   : > { %1917 = vmatprep.subr.bf16.mxu1 %v2166_v3  ;;  %1815 = vmatprep.mubr.msk.f32.mxu1 %vm2167_vm0, %v2168_v11 }
  0x2d   : > { %1783 = vmatmul.mubr.msk.f32.vlgmr.msra.gmra.mrb[2].mxu0 %vm387_vm1, %v2332_v18 }
  0x2e   : > { %1910 = vmatpush3.bf16.msra.mxu0 %v1909_v31  ;;  %1804 = vmatprep.mubr.msk.f32.mxu0 %vm2167_vm0, %v2168_v11 }
  0x2f   : > { %1911 = vmatprep.subr.bf16.mxu0 %v2166_v3  ;;  %1919 = vmatpush3.bf16.msra.mxu1 %v1918_v38 }
  0x30   : > { %1926 = vmatprep.subr.bf16.mxu1 %v2166_v3 }
  0x32   : > { %1913 = vmatpush3.bf16.msra.mxu0 %v1912_v37  ;;  %1816 = vmatmul.mubr.msk.f32.vlgmr.msra.gmra.mrb[4].mxu1 %vm387_vm1, %v2332_v18 }
  0x33   : > { %1920 = vmatprep.subr.bf16.mxu0 %v2166_v3  ;;  %1928 = vmatpush3.bf16.msra.mxu1 %v1927_v44  ;;  %v1659_v44 = vld [vmem:[%s2740_s2 + $0x3] ss:$0 sm:$0xff] }
  0x34   : > { %1929 = vmatprep.subr.bf16.mxu1 %v2166_v3  ;;  %1837 = vmatprep.mubr.msk.f32.mxu1 %vm2167_vm0, %v2168_v11 }
  0x35   : > { %1805 = vmatmul.mubr.msk.f32.vlgmr.msra.gmra.mrb[4].mxu0 %vm387_vm1, %v2332_v18 }
  0x36   : > { %1922 = vmatpush3.bf16.msra.mxu0 %v1921_v43  ;;  %1826 = vmatprep.mubr.msk.f32.mxu0 %vm2167_vm0, %v2168_v11  ;;  %v1651_v43 = vld [vmem:[%s2723_s6 + $0x2] ss:$0 sm:$0xff] }
  0x37   : > { %1923 = vmatprep.subr.bf16.mxu0 %v2166_v3  ;;  %1931 = vmatpush3.bf16.msra.mxu1 %v1930_v50 }
  0x38   : > { %1938 = vmatprep.subr.bf16.mxu1 %v2166_v3 }
  0x3a   : > { %1925 = vmatpush3.bf16.msra.mxu0 %v1924_v49  ;;  %1838 = vmatmul.mubr.msk.f32.vlgmr.msra.gmra.mrb[6].mxu1 %vm387_vm1, %v2332_v18 }
  0x3b   : > { %1932 = vmatprep.subr.bf16.mxu0 %v2166_v3  ;;  %1940 = vmatpush3.bf16.msra.mxu1 %v1939_v56 }
  0x3c   : > { %1941 = vmatprep.subr.bf16.mxu1 %v2166_v3  ;;  %1859 = vmatprep.mubr.msk.f32.mxu1 %vm2167_vm0, %v2168_v11 }
  0x3d   : > { %1827 = vmatmul.mubr.msk.f32.vlgmr.msra.gmra.mrb[6].mxu0 %vm387_vm1, %v2332_v18 }
  0x3e   : > { %1934 = vmatpush3.bf16.msra.mxu0 %v1933_v55  ;;  %1848 = vmatprep.mubr.msk.f32.mxu0 %vm2167_vm0, %v2168_v11 }
  0x3f   : > { %1935 = vmatprep.subr.bf16.mxu0 %v2166_v3  ;;  %1943 = vmatpush3.bf16.msra.mxu1 %v1942_v62 }
  0x40   : > { %1950 = vmatprep.subr.bf16.mxu1 %v2166_v3 }
  0x42   : > { %1937 = vmatpush3.bf16.msra.mxu0 %v1936_v61  ;;  %1860 = vmatmul.mubr.msk.f32.vlgmr.msra.gmra.mrb[8].mxu1 %vm387_vm1, %v2332_v18 }
  0x43   : > { %1944 = vmatprep.subr.bf16.mxu0 %v2166_v3  ;;  %1952 = vmatpush3.bf16.msra.mxu1 %v1951_v5 }
  0x44   : > { %1953 = vmatprep.subr.bf16.mxu1 %v2166_v3  ;;  %1881 = vmatprep.mubr.msk.f32.mxu1 %vm2167_vm0, %v2168_v11 }
  0x45   : > { %1849 = vmatmul.mubr.msk.f32.vlgmr.msra.gmra.mrb[8].mxu0 %vm387_vm1, %v2332_v18 }
  0x46   : > { %1946 = vmatpush3.bf16.msra.mxu0 %v1945_v4  ;;  %1870 = vmatprep.mubr.msk.f32.mxu0 %vm2167_vm0, %v2168_v11 }
  0x47   : > { %1947 = vmatprep.subr.bf16.mxu0 %v2166_v3  ;;  %1955 = vmatpush3.bf16.msra.mxu1 %v1954_v12  ;;  %v1600_v3 = vld [vmem:[%s2740_s2] ss:$0 sm:$0xff] }
  0x4a   : > { %1949 = vmatpush3.bf16.msra.mxu0 %v1948_v10  ;;  %1882 = vmatmul.mubr.msk.f32.vlgmr.msra.gmra.mrb[10].mxu1 %vm387_vm1, %v2332_v18 }
  0x4d   : > { %1871 = vmatmul.mubr.msk.f32.vlgmr.msra.gmra.mrb[10].mxu0 %vm387_vm1, %v2332_v18  ;;  %v1604_v18 = vld [vmem:[%s2723_s6] ss:$0 sm:$0xff] }
  0xf5   : > { %v540_v16 = vpop.f32.mrb[0].mxu1 }
  0xf6   : > { %v541_v17 = vadd.f32 %v1602_v13, %v540_v16  ;;  %v1773_v19 = vpop.f32.mrb[1].mxu1 }
  0xf8   : > { %v457_v11 = vpop.f32.mrb[0].mxu0  ;;  %544 = vst.msk [vmem:[%s2519_s25] sm:$0xff] %vm461_vm2, %v541_v17 }
  0xf9   : > { %v458_v14 = vadd.f32 %v1600_v3, %v457_v11  ;;  %v1762_v15 = vpop.f32.mrb[1].mxu0 }
  0xfb   : > { %462 = vst.msk [vmem:[%s2515_s24] sm:$0xff] %vm461_vm2, %v458_v14 }
  0xfd   : > { %v706_v24 = vpop.f32.mrb[2].mxu1 }
  0xfe   : > { %v707_v25 = vadd.f32 %v1611_v20, %v706_v24  ;;  %v1795_v26 = vpop.f32.mrb[3].mxu1 }
 0x100   : > { %v622_v21 = vpop.f32.mrb[2].mxu0  ;;  %1613 = vst.msk [vmem:[%s2515_s24 + $0x8] sm:$0xff] %vm461_vm2, %v707_v25 }
 0x101   : > { %v623_v22 = vadd.f32 %v1604_v18, %v622_v21  ;;  %v1784_v23 = vpop.f32.mrb[3].mxu0 }
 0x103   : > { %626 = vst.msk [vmem:[%s2529_s16] sm:$0xff] %vm461_vm2, %v623_v22 }
 0x105   : > { %v876_v32 = vpop.f32.mrb[4].mxu1 }
 0x106   : > { %v877_v33 = vadd.f32 %v1627_v28, %v876_v32  ;;  %v1817_v34 = vpop.f32.mrb[5].mxu1 }
 0x108   : > { %v791_v29 = vpop.f32.mrb[4].mxu0  ;;  %1629 = vst.msk [vmem:[%s2529_s16 + $0x8] sm:$0xff] %vm461_vm2, %v877_v33 }
 0x109   : > { %v792_v30 = vadd.f32 %v1619_v27, %v791_v29  ;;  %v1806_v31 = vpop.f32.mrb[5].mxu0 }
 0x10b   : > { %1621 = vst.msk [vmem:[%s2519_s25 + $0x8] sm:$0xff] %vm461_vm2, %v792_v30 }
 0x10d   : > { %v1046_v40 = vpop.f32.mrb[6].mxu1 }
 0x10e   : > { %v1047_v41 = vadd.f32 %v1643_v36, %v1046_v40  ;;  %v1839_v42 = vpop.f32.mrb[7].mxu1 }
 0x110   : > { %v961_v37 = vpop.f32.mrb[6].mxu0  ;;  %1645 = vst.msk [vmem:[%s2519_s25 + $0x10] sm:$0xff] %vm461_vm2, %v1047_v41 }
 0x111   : > { %v962_v38 = vadd.f32 %v1635_v35, %v961_v37  ;;  %v1828_v39 = vpop.f32.mrb[7].mxu0 }
 0x113   : > { %1637 = vst.msk [vmem:[%s2515_s24 + $0x10] sm:$0xff] %vm461_vm2, %v962_v38 }
 0x115   : > { %v1216_v48 = vpop.f32.mrb[8].mxu1 }
 0x116   : > { %v1217_v49 = vadd.f32 %v1659_v44, %v1216_v48  ;;  %v1861_v50 = vpop.f32.mrb[9].mxu1 }
 0x118   : > { %v1131_v45 = vpop.f32.mrb[8].mxu0  ;;  %1661 = vst.msk [vmem:[%s2515_s24 + $0x18] sm:$0xff] %vm461_vm2, %v1217_v49 }
 0x119   : > { %v1132_v46 = vadd.f32 %v1651_v43, %v1131_v45  ;;  %v1850_v47 = vpop.f32.mrb[9].mxu0 }
 0x11b   : > { %1653 = vst.msk [vmem:[%s2529_s16 + $0x10] sm:$0xff] %vm461_vm2, %v1132_v46 }
 0x11c   : > { %2039 = shalt.err (!%p2036_p5)
}
 0x11d   : > { %s2040_s29 = scalar_lea.hbm %s2571_s15, 512  ;;  %s2044_s18 = scalar_lea.hbm %s2724_s7, 1024 }
 0x11e   : > { %p2041_p6 = scmp.ne.s32.totalorder %s2571_s15, %s2040_s29  ;;  %p2045_p10 = scmp.lt.u32.totalorder %s2571_s15, %s2724_s7 }
 0x11f   : > { %p2046_p11 = scmp.lt.u32.totalorder %s2044_s18, %s2040_s29  ;;  %p2048_p13 = scmp.lt.u32.totalorder %s2040_s29, %s2571_s15 }
 0x120   : > { %p2042_p7 = pnand %p2041_p6, %p2266_p4 }
 0x121   : > { %p2047_p12 = por %p2046_p11, %p2045_p10 }
 0x122   : > { %p2043_p9 = pneg %p2042_p7 }
 0x123   : > { %p2049_p0 = por %p2048_p13, %p2047_p12 }
 0x125   : > { %p2050_p1 = pnand %p2049_p0, %p2043_p9 }
 0x127   : > { %2053 = shalt.err (!%p2050_p1)
}
 0x128   : > { %s2730_s1 = smov 128   ;;  %s2171_s26 = smov 8   ;;  %v1667_v51 = vld [vmem:[%s2721_s4 + $0x3] ss:$0 sm:$0xff]  ;;  %v1301_v53 = vpop.f32.mrb[10].mxu0  ;;  %v1386_v55 = vpop.f32.mrb[10].mxu1 }
 0x129   : > { %1956 = dma.vmem_to_hbm [thread:$0]  (%p2266_p4), %s2565_s23, 512, %s2571_s15, %s2580_s17, %s2730_s1, %s2730_s1, %s2171_s26   ;;  %v1302_v54 = vadd.f32 %v1667_v51, %v1301_v53  ;;  %v1872_v56 = vpop.f32.mrb[11].mxu0  ;;  %v1883_v58 = vpop.f32.mrb[11].mxu1 }
 0x12a   : > { %s2741_s28 = sadd.s32 4294967295, %s2164_s14   ;;  %s1451_s20 = sshll.u32 %s2529_s16, 4  ;;  %v1675_v52 = vld [vmem:[%s2723_s6 + $0x3] ss:$0 sm:$0xff]  ;;  %s2628_s20 = int_to_ptr.vmem [resolvable:$true] %s1451_s20 }
 0x12b   : > { %s2612_s18 = sand.u32 1, %s2741_s28   ;;  %s2742_s2 = sshll.u32 %s2519_s25, 4  ;;  %v1387_v57 = vadd.f32 %v1675_v52, %v1386_v55  ;;  %1669 = vst.msk [vmem:[%s2519_s25 + $0x18] sm:$0xff] %vm461_vm2, %v1302_v54  ;;  %s2620_s2 = int_to_ptr.vmem [resolvable:$true] %s2742_s2 }
 0x12c   : > { %s2626_s17 = scalar_lea.hbm %s2725_s8, %s2563_s27  ;;  %s2634_s24 = scalar_lea.hbm %s2726_s9, %s2563_s27 }
 0x12d   : > { %1677 = vst.msk [vmem:[%s2529_s16 + $0x18] sm:$0xff] %vm461_vm2, %v1387_v57  ;;  %s1398_s28 = scalar_lea.sflag [#allocation5], %s2612_s18  ;;  %s2054_s0 = scalar_lea.vmem %s2620_s2, 512 }
 0x12e   : > { %p2055_p2 = scmp.ne.s32.totalorder %s2620_s2, %s2054_s0  ;;  %s2172_s23 = smov [#allocation4]  }
 0x12f   : > { %s2058_s15 = sshll.u32 %s2172_s23, 4  ;;  %s2059_s15 = int_to_ptr.vmem [resolvable:$false] %s2058_s15 }
 0x130   : > { %p2056_p3 = pnand %p2055_p2, %p2266_p4  ;;  %s2060_s1 = scalar_lea.vmem %s2059_s15, 1024 }
 0x131   : > { %p2061_p6 = scmp.lt.s32.totalorder %s2620_s2, %s2059_s15  ;;  %p2062_p7 = scmp.lt.s32.totalorder %s2060_s1, %s2054_s0 }
 0x132   : > { %p2057_p5 = pneg %p2056_p3 }
 0x133   : > { %p2063_p9 = por %p2062_p7, %p2061_p6 }
 0x135   : > { %p2064_p10 = pnand %p2063_p9, %p2057_p5 }
 0x137   : > { %2067 = shalt.err (!%p2064_p10)
}
 0x138   : > { %s2068_s25 = scalar_lea.hbm %s2626_s17, 512  ;;  %s2072_s12 = scalar_lea.hbm %s2725_s8, 1024 }
 0x139   : > { %p2069_p11 = scmp.ne.s32.totalorder %s2626_s17, %s2068_s25  ;;  %p2073_p0 = scmp.lt.u32.totalorder %s2626_s17, %s2725_s8 }
 0x13a   : > { %p2074_p1 = scmp.lt.u32.totalorder %s2072_s12, %s2068_s25  ;;  %p2076_p3 = scmp.lt.u32.totalorder %s2068_s25, %s2626_s17 }
 0x13b   : > { %p2070_p12 = pnand %p2069_p11, %p2266_p4 }
 0x13c   : > { %p2075_p2 = por %p2074_p1, %p2073_p0 }
 0x13d   : > { %p2071_p13 = pneg %p2070_p12 }
 0x13e   : > { %p2077_p5 = por %p2076_p3, %p2075_p2 }
 0x140   : > { %p2078_p6 = pnand %p2077_p5, %p2071_p13 }
 0x142   : > { %2081 = shalt.err (!%p2078_p6)
}
 0x143   : > { %s2743_s1 = smov 128   ;;  %s2082_s0 = scalar_lea.vmem %s2628_s20, 512 }
 0x144   : > { %1957 = dma.vmem_to_hbm [thread:$0]  (%p2266_p4), %s2620_s2, 512, %s2626_s17, %s1398_s28, %s2743_s1, %s2743_s1, %s2171_s26  }
 0x145   : > { %p2083_p7 = scmp.ne.s32.totalorder %s2628_s20, %s2082_s0  ;;  %s2173_s15 = smov [#allocation6]  }
 0x146   : > { %s2086_s25 = sshll.u32 %s2173_s15, 4  ;;  %s2087_s25 = int_to_ptr.vmem [resolvable:$false] %s2086_s25 }
 0x147   : > { %p2084_p9 = pnand %p2083_p7, %p2266_p4  ;;  %s2088_s16 = scalar_lea.vmem %s2087_s25, 1024 }
 0x148   : > { %p2089_p11 = scmp.lt.s32.totalorder %s2628_s20, %s2087_s25  ;;  %p2090_p12 = scmp.lt.s32.totalorder %s2088_s16, %s2082_s0 }
 0x149   : > { %p2085_p10 = pneg %p2084_p9 }
 0x14a   : > { %p2091_p13 = por %p2090_p12, %p2089_p11 }
 0x14c   : > { %p2092_p0 = pnand %p2091_p13, %p2085_p10 }
 0x14e   : > { %2095 = shalt.err (!%p2092_p0)
}
 0x14f   : > { %s2096_s2 = scalar_lea.hbm %s2634_s24, 512  ;;  %s2100_s12 = scalar_lea.hbm %s2726_s9, 1024 }
 0x150   : > { %p2097_p1 = scmp.ne.s32.totalorder %s2634_s24, %s2096_s2  ;;  %p2101_p5 = scmp.lt.u32.totalorder %s2634_s24, %s2726_s9 }
 0x151   : > { %p2102_p6 = scmp.lt.u32.totalorder %s2100_s12, %s2096_s2  ;;  %p2104_p9 = scmp.lt.u32.totalorder %s2096_s2, %s2634_s24 }
 0x152   : > { %p2098_p2 = pnand %p2097_p1, %p2266_p4 }
 0x153   : > { %p2103_p7 = por %p2102_p6, %p2101_p5 }
 0x154   : > { %p2099_p3 = pneg %p2098_p2 }
 0x155   : > { %p2105_p10 = por %p2104_p9, %p2103_p7 }
 0x157   : > { %p2106_p11 = pnand %p2105_p10, %p2099_p3 }
 0x159   : > { %2109 = shalt.err (!%p2106_p11)
}
 0x15a   : > { %1958 = dma.vmem_to_hbm [thread:$0]  (%p2266_p4), %s2628_s20, 512, %s2634_s24, %s1398_s28, %s2743_s1, %s2743_s1, %s2171_s26  }
 0x15b PF: > { %p1972_p12 = scmp.ge.s32.totalorder %s2164_s14, 2  ;;  %s1466_s0 = sand.u32 1, %s2144_s30  }
 0x15c   : > { %s1467_s15 = scalar_lea.sflag [#allocation3], %s1466_s0 }
 0x15d   : > { %p1963_p13 = pnand %p1972_p12, %p2275_p8 }
 0x15f   : > { %2135 = dma.done.wait (!%p1963_p13), %s1467_s15, 512  }
 0x160   : > { %2137 = vsyncadd (!%p1963_p13), %s1467_s15, 4294966784  ;;  %s2744_s19 = sadd.s32 4294967294, %s2164_s14  }
 0x161   : > { %s1475_s25 = sand.u32 1, %s2744_s19  }
 0x162   : > { %s1476_s16 = scalar_lea.sflag [#allocation5], %s1475_s25 }
 0x163   : > { %2139 = dma.done.wait (!%p1963_p13), %s1476_s16, 1024  }
 0x164   : > { %2141 = vsyncadd (!%p1963_p13), %s1476_s16, 4294966272  ;;  %s26_s14 = sadd.s32 1, %s2164_s14   ;;  %s2745_s26 = sld [smem:[#allocation9_spill]] }
 0x165   : > { %p23_p4 = scmp.ge.s32.totalorder %s26_s14, 4   ;;  %s2746_s30 = smov %s2148_s10 }
 0x166   : > { %s2747_s10 = smov %s2152_s11  ;;  %s2748_s11 = smov %s2281_s22 }
 0x167   : > { %s2749_s12 = smov %s2160_s13  ;;  %25 = sbr.rel (!%p23_p4) target bundleno = 10 (0xa), region = 142 }
 0x16a   : > { %s2750_s13 = smov %s2745_s26 }
 0x16e   :  { %1490 = vsyncpa [#allocation3], 1 }
 0x16f   :  { %1492 = vsyncpa [#allocation3 + $0x1], 1 }
 0x170   :  { %1493 = vsyncpa [#allocation5], 1 }
 0x171   :  { %1495 = vsyncpa [#allocation5 + $0x1], 1 }

</bundles_post_ra>
